<compile_context>
chip_gen: v5e
topology: v5e:2x2
jax: 0.10.0
libtpu: 0.0.40
codegen_flags: <defaults>
</compile_context>

<pallas_src>
import math
import functools

import jax
import jax.numpy as jnp
import numpy as np
from jax.experimental import pallas as pl
from jax.experimental.pallas import tpu as pltpu


_VMEM = pl.BlockSpec(memory_space=pltpu.MemorySpace.VMEM)


# ----------------------------- fused Pallas kernel ---------------------------

def decoder_kernel(*refs, num_layers):
    """refs = [x, w_fused, b_fused, s0, g0, b0, (w_i, s_i, g_i, b_i)*..., out].

    x        : (B, latent)
    w_fused  : (latent, D0)   mlp folded into deconv0 (pre-shuffle column layout)
    b_fused  : (1, D0)        mlp bias pushed through deconv0
    w_i      : (D_{i-1}, D_i) block-diagonal deconv-as-matmul weight (i >= 1)
    s_i      : (D_i, D_i)     per-channel group-averaging matrix (includes 1/count)
    g_i, b_i : (1, D_i)       BN gamma/beta broadcast to columns
    out      : (B, D_last)
    """
    x_ref = refs[0]
    wf_ref, bf_ref = refs[1], refs[2]
    o_ref = refs[-1]
    idx = 3

    # stage 0: fused mlp + first ConvTranspose2d (single MXU matmul)
    y = jnp.dot(x_ref[...], wf_ref[...], preferred_element_type=jnp.float32) + bf_ref[...]

    for i in range(num_layers):
        if i >= 1:
            w_ref = refs[idx]; idx += 1
            y = jnp.dot(y, w_ref[...], preferred_element_type=jnp.float32)
        s_ref, g_ref, b_ref = refs[idx], refs[idx + 1], refs[idx + 2]; idx += 3

        # BatchNorm2d training-mode batch stats on the pre-shuffle layout:
        # one row reduction + tiny matmul against the group-averaging matrix.
        rs = jnp.sum(y, axis=0, keepdims=True)          # (1, D) column sums
        rq = jnp.sum(y * y, axis=0, keepdims=True)      # (1, D) column sum of squares
        mean = jnp.dot(rs, s_ref[...], preferred_element_type=jnp.float32)
        ex2 = jnp.dot(rq, s_ref[...], preferred_element_type=jnp.float32)
        var = ex2 - mean * mean                          # biased variance (PyTorch norm path)
        y = (y - mean) * jax.lax.rsqrt(var + 1e-5) * g_ref[...] + b_ref[...]

        if i < num_layers - 1:
            c = math.sqrt(2.0 / math.pi)                 # NewGELU (tanh approx)
            y = 0.5 * y * (1.0 + jnp.tanh(c * (y + 0.044715 * y * y * y)))
        else:
            y = 1.0 / (1.0 + jnp.exp(-y))                # Sigmoid (last block)

    o_ref[...] = y


# ------------------------------- Decoder config ------------------------------

class Config:
    in_channels = 1
    conv_channels = [4, 8]          # encoder order; decoder uses reversed
    dec_kernel_sizes = [2, 2]
    stride = 2
    latent_dims = 16
    compressed_size = (4, 4)
    flattened_size = 8 * 4 * 4      # channels[0] * h * w = 128


def init_params(config, key):
    channels = list(config.conv_channels[::-1]) + [config.in_channels]   # [8, 4, 1]
    keys = jax.random.split(key, 2 + 4 * (len(channels) - 1))
    params = {
        "mlp_w": 0.1 * jax.random.normal(keys[0], (config.latent_dims, config.flattened_size), jnp.float32),
        "mlp_b": 0.1 * jax.random.normal(keys[1], (1, config.flattened_size), jnp.float32),
    }
    for i in range(len(channels) - 1):
        cin, cout = channels[i], channels[i + 1]
        k = config.dec_kernel_sizes[i]
        kk = keys[2 + 4 * i: 2 + 4 * (i + 1)]
        params[f"deconv{i}_w4"] = 0.2 * jax.random.normal(kk[0], (cin, cout, k, k), jnp.float32)
        params[f"bn{i}_g"] = (1.0 + 0.1 * jax.random.normal(kk[1], (1, cout), jnp.float32))
        params[f"bn{i}_b"] = 0.1 * jax.random.normal(kk[2], (1, cout), jnp.float32)
    return params, channels


# ------------------- one-time weight folding / precomputation ----------------

def prepare_fused_params(params, config, channels, batch):
    """Fold mlp into deconv0, build block-diagonal deconv weights operating on the
    pre-shuffle layout, and build per-layer BN column metadata."""
    h, w = config.compressed_size
    ks = config.dec_kernel_sizes
    L = len(channels) - 1
    latent = config.latent_dims
    fused = {}

    # --- stage 0: W_fused = fold(mlp_w) @ W_deconv0, columns = (h, w, c1, kh, kw)
    C0, C1, k0 = channels[0], channels[1], ks[0]
    mlp_w4 = params["mlp_w"].reshape(latent, C0, h, w)
    mlp_b4 = params["mlp_b"].reshape(C0, h, w)
    W0 = params["deconv0_w4"]                                  # (C0, C1, k0, k0)
    fused["w0"] = jnp.einsum("lchw,cokt->lhwokt", mlp_w4, W0).reshape(latent, h * w * C1 * k0 * k0)
    fused["b0"] = jnp.einsum("chw,cokt->hwokt", mlp_b4, W0).reshape(1, h * w * C1 * k0 * k0)

    # --- per-layer BN metadata + block-diag weights for layers >= 1
    X = h * w                       # outer positions preceding this layer's channel axis
    for i in range(L):
        Ci, Cn, k = channels[i], channels[i + 1], ks[i]
        D = X * Cn * k * k
        ch = (np.arange(D) // (k * k)) % Cn                    # channel of each column
        same = (ch[:, None] == ch[None, :]).astype(np.float32)
        group = X * k * k                                       # columns per channel
        fused[f"s{i}"] = jnp.asarray(same / float(batch * group))   # group-average incl. 1/count
        g = params[f"bn{i}_g"][0]
        b = params[f"bn{i}_b"][0]
        fused[f"g{i}"] = jnp.asarray(g)[ch][None, :]
        fused[f"bb{i}"] = jnp.asarray(b)[ch][None, :]

        if i >= 1:
            # block-diagonal ConvTranspose weight on the pre-shuffle layout:
            # rows = (outer, c_i, prev-subpos), cols = (outer, prev-subpos, c_{i+1}, kh, kw)
            p = ks[i - 1] ** 2
            Xp = X // p
            Wi = params[f"deconv{i}_w4"]                        # (Ci, Cn, k, k)
            wb = jnp.einsum("xy,pq,cdmn->xcpyqdmn",
                            jnp.eye(Xp, dtype=jnp.float32),
                            jnp.eye(p, dtype=jnp.float32),
                            Wi).reshape(Xp * Ci * p, Xp * p * Cn * k * k)
            fused[f"w{i}"] = wb

        X = X * k * k   # this layer's kernel positions join the outer positions
    return fused


def final_unshuffle(z, B, h, w, ks, c_out):
    """(B, h*w*prod(k^2)*c_out) pre-shuffle columns -> NCHW (B, c_out, H_out, W_out)."""
    L = len(ks)
    shape = [B, h, w]
    for k in ks[:-1]:
        shape += [k, k]
    shape += [c_out, ks[-1], ks[-1]]
    z = z.reshape(shape)
    c_axis = 3 + 2 * (L - 1)
    perm = [0, c_axis, 1] + [3 + 2 * i for i in range(L - 1)] + [c_axis + 1]
    perm += [2] + [4 + 2 * i for i in range(L - 1)] + [c_axis + 2]
    z = z.transpose(perm)
    scale = int(np.prod(ks))
    return z.reshape(B, c_out, h * scale, w * scale)


def decoder_forward(x, fused, config, channels):
    """x: (B, latent_dims) -> (B, in_channels, H_out, W_out) (NCHW like PyTorch)."""
    B = x.shape[0]
    h, w = config.compressed_size
    ks = config.dec_kernel_sizes
    L = len(channels) - 1
    D_out = h * w * channels[-1] * int(np.prod([k * k for k in ks]))

    inputs = [x, fused["w0"], fused["b0"], fused["s0"], fused["g0"], fused["bb0"]]
    for i in range(1, L):
        inputs += [fused[f"w{i}"], fused[f"s{i}"], fused[f"g{i}"], fused[f"bb{i}"]]

    z = pl.pallas_call(
        functools.partial(decoder_kernel, num_layers=L),
        out_shape=jax.ShapeDtypeStruct((B, D_out), jnp.float32),
        in_specs=[_VMEM] * len(inputs),
        out_specs=_VMEM,
    )(*inputs)

    # single tiny pixel-shuffle to NCHW, done once at the very end (XLA glue)
    return final_unshuffle(z, B, h, w, ks, channels[-1])


# --------------------------- pure-JAX reference ------------------------------

def reference_forward(x, params, config, channels):
    B = x.shape[0]
    h, w = config.compressed_size
    y = x @ params["mlp_w"] + params["mlp_b"][0]
    y = y.reshape(B, channels[0], h, w)
    H, W = h, w
    for i in range(len(channels) - 1):
        cout = channels[i + 1]
        k = config.dec_kernel_sizes[i]
        W4 = params[f"deconv{i}_w4"]
        t = jnp.einsum("nihw,iokl->nohkwl", y, W4).reshape(B, cout, H * k, W * k)
        mean = t.mean(axis=(0, 2, 3), keepdims=True)
        var = ((t - mean) ** 2).mean(axis=(0, 2, 3), keepdims=True)
        g = params[f"bn{i}_g"][0].reshape(1, -1, 1, 1)
        b = params[f"bn{i}_b"][0].reshape(1, -1, 1, 1)
        t = (t - mean) / jnp.sqrt(var + 1e-5) * g + b
        if i == len(channels) - 2:
            y = 1.0 / (1.0 + jnp.exp(-t))
        else:
            c = math.sqrt(2.0 / math.pi)
            y = 0.5 * t * (1.0 + jnp.tanh(c * (t + 0.044715 * t ** 3)))
        H, W = H * k, W * k
    return y


# ----------------------------------- main ------------------------------------

if __name__ == "__main__":
    config = Config()
    key = jax.random.PRNGKey(0)
    kx, kp = jax.random.split(key)

    B = 2
    x = jax.random.normal(kx, (B, config.latent_dims), jnp.float32)      # latent input
    params, channels = init_params(config, kp)
    fused = prepare_fused_params(params, config, channels, batch=B)      # one-time folding

    out = decoder_forward(x, fused, config, channels)
    out = jax.block_until_ready(out)

    ref = reference_forward(x, params, config, channels)
    assert out.shape == (B, config.in_channels, 16, 16), out.shape
    np.testing.assert_allclose(np.asarray(out), np.asarray(ref), rtol=1e-3, atol=1e-3)

    print("KERNEL_OK")
</pallas_src>

<mosaic_0001>
module attributes {stable_mosaic.version = 11 : i64} {
  func.func @decoder_kernel(%arg0: memref<2x16xf32, #tpu.memory_space<vmem>>, %arg1: memref<16x256xf32, #tpu.memory_space<vmem>>, %arg2: memref<1x256xf32, #tpu.memory_space<vmem>>, %arg3: memref<256x256xf32, #tpu.memory_space<vmem>>, %arg4: memref<1x256xf32, #tpu.memory_space<vmem>>, %arg5: memref<1x256xf32, #tpu.memory_space<vmem>>, %arg6: memref<256x256xf32, #tpu.memory_space<vmem>>, %arg7: memref<256x256xf32, #tpu.memory_space<vmem>>, %arg8: memref<1x256xf32, #tpu.memory_space<vmem>>, %arg9: memref<1x256xf32, #tpu.memory_space<vmem>>, %arg10: memref<2x256xf32, #tpu.memory_space<vmem>>) attributes {dimension_semantics = [], scalar_prefetch = 0 : i64, scratch_operands = 0 : i64, tpu.core_type = #tpu.core_type<tc>} {
    %c0 = arith.constant 0 : index
    %c0_0 = arith.constant 0 : index
    %0 = vector.load %arg0[%c0, %c0_0] : memref<2x16xf32, #tpu.memory_space<vmem>>, vector<2x16xf32>
    %c0_1 = arith.constant 0 : index
    %c0_2 = arith.constant 0 : index
    %1 = vector.load %arg1[%c0_1, %c0_2] : memref<16x256xf32, #tpu.memory_space<vmem>>, vector<16x256xf32>
    %cst = arith.constant dense<0.000000e+00> : vector<2x256xf32>
    %2 = tpu.matmul %0, %1, %cst {dimension_numbers = #tpu.dot_dimension_numbers<[1], [0], [0], [1], [0, 0, 1, 1], [], []>} : vector<2x16xf32>, vector<16x256xf32>, vector<2x256xf32> -> vector<2x256xf32>
    %c0_3 = arith.constant 0 : index
    %c0_4 = arith.constant 0 : index
    %3 = vector.load %arg2[%c0_3, %c0_4] : memref<1x256xf32, #tpu.memory_space<vmem>>, vector<1x256xf32>
    %4 = vector.broadcast %3 : vector<1x256xf32> to vector<2x256xf32>
    %5 = arith.addf %2, %4 : vector<2x256xf32>
    %cst_5 = arith.constant dense<0.000000e+00> : vector<256xf32>
    %6 = vector.multi_reduction <add>, %5, %cst_5 [0] : vector<2x256xf32> to vector<256xf32>
    %7 = vector.shape_cast %6 : vector<256xf32> to vector<1x256xf32>
    %8 = arith.mulf %5, %5 : vector<2x256xf32>
    %cst_6 = arith.constant dense<0.000000e+00> : vector<256xf32>
    %9 = vector.multi_reduction <add>, %8, %cst_6 [0] : vector<2x256xf32> to vector<256xf32>
    %10 = vector.shape_cast %9 : vector<256xf32> to vector<1x256xf32>
    %c0_7 = arith.constant 0 : index
    %c0_8 = arith.constant 0 : index
    %11 = vector.load %arg3[%c0_7, %c0_8] : memref<256x256xf32, #tpu.memory_space<vmem>>, vector<256x256xf32>
    %cst_9 = arith.constant dense<0.000000e+00> : vector<1x256xf32>
    %12 = tpu.matmul %7, %11, %cst_9 {dimension_numbers = #tpu.dot_dimension_numbers<[1], [0], [0], [1], [0, 0, 1, 1], [], []>} : vector<1x256xf32>, vector<256x256xf32>, vector<1x256xf32> -> vector<1x256xf32>
    %c0_10 = arith.constant 0 : index
    %c0_11 = arith.constant 0 : index
    %13 = vector.load %arg3[%c0_10, %c0_11] : memref<256x256xf32, #tpu.memory_space<vmem>>, vector<256x256xf32>
    %cst_12 = arith.constant dense<0.000000e+00> : vector<1x256xf32>
    %14 = tpu.matmul %10, %13, %cst_12 {dimension_numbers = #tpu.dot_dimension_numbers<[1], [0], [0], [1], [0, 0, 1, 1], [], []>} : vector<1x256xf32>, vector<256x256xf32>, vector<1x256xf32> -> vector<1x256xf32>
    %15 = arith.mulf %12, %12 : vector<1x256xf32>
    %16 = arith.subf %14, %15 : vector<1x256xf32>
    %17 = vector.broadcast %12 : vector<1x256xf32> to vector<2x256xf32>
    %18 = arith.subf %5, %17 : vector<2x256xf32>
    %cst_13 = arith.constant 9.99999974E-6 : f32
    %19 = vector.broadcast %cst_13 : f32 to vector<1x256xf32>
    %20 = arith.addf %16, %19 : vector<1x256xf32>
    %21 = math.rsqrt %20 : vector<1x256xf32>
    %22 = vector.broadcast %21 : vector<1x256xf32> to vector<2x256xf32>
    %23 = arith.mulf %18, %22 : vector<2x256xf32>
    %c0_14 = arith.constant 0 : index
    %c0_15 = arith.constant 0 : index
    %24 = vector.load %arg4[%c0_14, %c0_15] : memref<1x256xf32, #tpu.memory_space<vmem>>, vector<1x256xf32>
    %25 = vector.broadcast %24 : vector<1x256xf32> to vector<2x256xf32>
    %26 = arith.mulf %23, %25 : vector<2x256xf32>
    %c0_16 = arith.constant 0 : index
    %c0_17 = arith.constant 0 : index
    %27 = vector.load %arg5[%c0_16, %c0_17] : memref<1x256xf32, #tpu.memory_space<vmem>>, vector<1x256xf32>
    %28 = vector.broadcast %27 : vector<1x256xf32> to vector<2x256xf32>
    %29 = arith.addf %26, %28 : vector<2x256xf32>
    %cst_18 = arith.constant 5.000000e-01 : f32
    %30 = vector.broadcast %cst_18 : f32 to vector<2x256xf32>
    %31 = arith.mulf %30, %29 : vector<2x256xf32>
    %cst_19 = arith.constant 4.471500e-02 : f32
    %32 = vector.broadcast %cst_19 : f32 to vector<2x256xf32>
    %33 = arith.mulf %32, %29 : vector<2x256xf32>
    %34 = arith.mulf %33, %29 : vector<2x256xf32>
    %35 = arith.mulf %34, %29 : vector<2x256xf32>
    %36 = arith.addf %29, %35 : vector<2x256xf32>
    %cst_20 = arith.constant 0.797884583 : f32
    %37 = vector.broadcast %cst_20 : f32 to vector<2x256xf32>
    %38 = arith.mulf %37, %36 : vector<2x256xf32>
    %39 = math.tanh %38 : vector<2x256xf32>
    %cst_21 = arith.constant 1.000000e+00 : f32
    %40 = vector.broadcast %cst_21 : f32 to vector<2x256xf32>
    %41 = arith.addf %40, %39 : vector<2x256xf32>
    %42 = arith.mulf %31, %41 : vector<2x256xf32>
    %c0_22 = arith.constant 0 : index
    %c0_23 = arith.constant 0 : index
    %43 = vector.load %arg6[%c0_22, %c0_23] : memref<256x256xf32, #tpu.memory_space<vmem>>, vector<256x256xf32>
    %cst_24 = arith.constant dense<0.000000e+00> : vector<2x256xf32>
    %44 = tpu.matmul %42, %43, %cst_24 {dimension_numbers = #tpu.dot_dimension_numbers<[1], [0], [0], [1], [0, 0, 1, 1], [], []>} : vector<2x256xf32>, vector<256x256xf32>, vector<2x256xf32> -> vector<2x256xf32>
    %cst_25 = arith.constant dense<0.000000e+00> : vector<256xf32>
    %45 = vector.multi_reduction <add>, %44, %cst_25 [0] : vector<2x256xf32> to vector<256xf32>
    %46 = vector.shape_cast %45 : vector<256xf32> to vector<1x256xf32>
    %47 = arith.mulf %44, %44 : vector<2x256xf32>
    %cst_26 = arith.constant dense<0.000000e+00> : vector<256xf32>
    %48 = vector.multi_reduction <add>, %47, %cst_26 [0] : vector<2x256xf32> to vector<256xf32>
    %49 = vector.shape_cast %48 : vector<256xf32> to vector<1x256xf32>
    %c0_27 = arith.constant 0 : index
    %c0_28 = arith.constant 0 : index
    %50 = vector.load %arg7[%c0_27, %c0_28] : memref<256x256xf32, #tpu.memory_space<vmem>>, vector<256x256xf32>
    %cst_29 = arith.constant dense<0.000000e+00> : vector<1x256xf32>
    %51 = tpu.matmul %46, %50, %cst_29 {dimension_numbers = #tpu.dot_dimension_numbers<[1], [0], [0], [1], [0, 0, 1, 1], [], []>} : vector<1x256xf32>, vector<256x256xf32>, vector<1x256xf32> -> vector<1x256xf32>
    %c0_30 = arith.constant 0 : index
    %c0_31 = arith.constant 0 : index
    %52 = vector.load %arg7[%c0_30, %c0_31] : memref<256x256xf32, #tpu.memory_space<vmem>>, vector<256x256xf32>
    %cst_32 = arith.constant dense<0.000000e+00> : vector<1x256xf32>
    %53 = tpu.matmul %49, %52, %cst_32 {dimension_numbers = #tpu.dot_dimension_numbers<[1], [0], [0], [1], [0, 0, 1, 1], [], []>} : vector<1x256xf32>, vector<256x256xf32>, vector<1x256xf32> -> vector<1x256xf32>
    %54 = arith.mulf %51, %51 : vector<1x256xf32>
    %55 = arith.subf %53, %54 : vector<1x256xf32>
    %56 = vector.broadcast %51 : vector<1x256xf32> to vector<2x256xf32>
    %57 = arith.subf %44, %56 : vector<2x256xf32>
    %cst_33 = arith.constant 9.99999974E-6 : f32
    %58 = vector.broadcast %cst_33 : f32 to vector<1x256xf32>
    %59 = arith.addf %55, %58 : vector<1x256xf32>
    %60 = math.rsqrt %59 : vector<1x256xf32>
    %61 = vector.broadcast %60 : vector<1x256xf32> to vector<2x256xf32>
    %62 = arith.mulf %57, %61 : vector<2x256xf32>
    %c0_34 = arith.constant 0 : index
    %c0_35 = arith.constant 0 : index
    %63 = vector.load %arg8[%c0_34, %c0_35] : memref<1x256xf32, #tpu.memory_space<vmem>>, vector<1x256xf32>
    %64 = vector.broadcast %63 : vector<1x256xf32> to vector<2x256xf32>
    %65 = arith.mulf %62, %64 : vector<2x256xf32>
    %c0_36 = arith.constant 0 : index
    %c0_37 = arith.constant 0 : index
    %66 = vector.load %arg9[%c0_36, %c0_37] : memref<1x256xf32, #tpu.memory_space<vmem>>, vector<1x256xf32>
    %67 = vector.broadcast %66 : vector<1x256xf32> to vector<2x256xf32>
    %68 = arith.addf %65, %67 : vector<2x256xf32>
    %cst_38 = arith.constant 0.000000e+00 : f32
    %69 = vector.broadcast %cst_38 : f32 to vector<2x256xf32>
    %70 = arith.subf %69, %68 : vector<2x256xf32>
    %71 = math.exp %70 : vector<2x256xf32>
    %cst_39 = arith.constant 1.000000e+00 : f32
    %72 = vector.broadcast %cst_39 : f32 to vector<2x256xf32>
    %73 = arith.addf %72, %71 : vector<2x256xf32>
    %cst_40 = arith.constant 1.000000e+00 : f32
    %74 = vector.broadcast %cst_40 : f32 to vector<2x256xf32>
    %75 = arith.divf %74, %73 : vector<2x256xf32>
    %c0_41 = arith.constant 0 : index
    %c0_42 = arith.constant 0 : index
    %76 = vector.load %arg10[%c0_41, %c0_42] : memref<2x256xf32, #tpu.memory_space<vmem>>, vector<2x256xf32>
    tpu.vector_store %arg10[%c0_41, %c0_42], %75 {strides = array<i32>} : memref<2x256xf32, #tpu.memory_space<vmem>>, vector<2x256xf32>,
    return
  }
}

</mosaic_0001>

<bundles_post_ra>
// kernel: tpu_custom_call.1
= control target key start
LH: loop header
LB: loop body
LE: loop exit
PB: predicated region body
PF: predicated region fallthrough
CT: control target
= control target key end

     0   :  { %15 = vsyncpa [#allocation3], 0  ;;  %s1877_s0 = inlined_call_operand.hbm [shape: f32[2,16], index: 0, kind: input, shape index: {}]   ;;  %s1878_s1 = inlined_call_operand.hbm [shape: f32[16,256], index: 1, kind: input, shape index: {}]   ;;  %s1879_s2 = inlined_call_operand.hbm [shape: f32[1,256], index: 2, kind: input, shape index: {}]   ;;  %s1880_s3 = inlined_call_operand.hbm [shape: f32[256,256], index: 3, kind: input, shape index: {}]   ;;  %s1881_s4 = inlined_call_operand.vmem [shape: f32[1,256], index: 4, kind: input, shape index: {}]   ;;  %s1882_s5 = inlined_call_operand.vmem [shape: f32[1,256], index: 5, kind: input, shape index: {}]   ;;  %s1883_s6 = inlined_call_operand.hbm [shape: f32[256,256], index: 6, kind: input, shape index: {}]   ;;  %s1884_s7 = inlined_call_operand.hbm [shape: f32[256,256], index: 7, kind: input, shape index: {}]   ;;  %s1885_s8 = inlined_call_operand.vmem [shape: f32[1,256], index: 8, kind: input, shape index: {}]   ;;  %s1886_s9 = inlined_call_operand.vmem [shape: f32[1,256], index: 9, kind: input, shape index: {}]   ;;  %s1887_s10 = inlined_call_operand.hbm [shape: f32[2,256], index: 10, kind: output, shape index: {}]  }
   0x1   :  { %16 = vsyncpa [#allocation6], 0 }
   0x2   :  { %17 = vsyncpa [#allocation9], 0 }
   0x3   :  { %18 = vsyncpa [#allocation12], 0  ;;  %s35_s15 = sshll.u32 %s1878_s1, 4  ;;  %s36_s15 = int_to_ptr.hbm [resolvable:$true] %s35_s15 }
   0x4   :  { %19 = vsyncpa [#allocation4], 0  ;;  %s1225_s16 = smov [#allocation5]   ;;  %s59_s20 = sshll.u32 %s1880_s3, 4  ;;  %s60_s20 = int_to_ptr.hbm [resolvable:$true] %s59_s20 }
   0x5   :  { %s37_s17 = sshll.u32 %s1225_s16, 4  ;;  %s1226_s21 = smov 256   ;;  %s38_s17 = int_to_ptr.vmem [resolvable:$true] %s37_s17 }
   0x6   :  { %s1227_s22 = smov 16   ;;  %s1228_s23 = smov [#allocation8]  }
   0x7   :  { %43 = dma.hbm_to_vmem [thread:$0]  %s36_s15, 512, %s38_s17, [#allocation6], %s1226_s21, %s1226_s21, %s1227_s22  }
   0x8   :  { %s61_s24 = sshll.u32 %s1228_s23, 4  ;;  %s25_s26 = sshll.u32 %s1877_s0, 4  ;;  %s62_s24 = int_to_ptr.vmem [resolvable:$true] %s61_s24  ;;  %s26_s26 = int_to_ptr.hbm [resolvable:$true] %s25_s26 }
   0x9   :  { %67 = dma.hbm_to_vmem [thread:$0]  %s60_s20, 8192, %s62_s24, [#allocation9], %s1226_s21, %s1226_s21, %s1227_s22  }
   0xa   :  { %s49_s28 = sshll.u32 %s1879_s2, 4  ;;  %s1229_s29 = smov [#allocation2]   ;;  %s50_s28 = int_to_ptr.hbm [resolvable:$true] %s49_s28 }
   0xb   :  { %s27_s30 = sshll.u32 %s1229_s29, 4  ;;  %s1230_s11 = smov [#allocation7]   ;;  %s28_s30 = int_to_ptr.vmem [resolvable:$true] %s27_s30 }
   0xc   :  { %30 = dma.hbm_to_vmem [thread:$0]  %s26_s26, 32, %s28_s30, [#allocation3]  }
   0xd   :  { %s51_s12 = sshll.u32 %s1230_s11, 4  ;;  %s76_s0 = sshll.u32 %s1883_s6, 4  ;;  %s52_s12 = int_to_ptr.vmem [resolvable:$true] %s51_s12  ;;  %s77_s0 = int_to_ptr.hbm [resolvable:$true] %s76_s0 }
   0xe   :  { %54 = dma.hbm_to_vmem [thread:$0]  %s50_s28, 32, %s52_s12, [#allocation6]  }
   0xf   :  { %s89_s17 = sshll.u32 %s1884_s7, 4  ;;  %s1231_s18 = smov [#allocation10]   ;;  %s90_s17 = int_to_ptr.hbm [resolvable:$true] %s89_s17 }
  0x10   :  { %s78_s2 = sshll.u32 %s1231_s18, 4  ;;  %s1232_s19 = smov [#allocation11]   ;;  %s79_s2 = int_to_ptr.vmem [resolvable:$true] %s78_s2 }
  0x11   :  { %84 = dma.hbm_to_vmem [thread:$0]  %s77_s0, 8192, %s79_s2, [#allocation9], %s1226_s21, %s1226_s21, %s1227_s22  }
  0x12   :  { %s91_s20 = sshll.u32 %s1232_s19, 4  ;;  %s92_s20 = int_to_ptr.vmem [resolvable:$true] %s91_s20 }
  0x13   :  { %97 = dma.hbm_to_vmem [thread:$0]  %s90_s17, 8192, %s92_s20, [#allocation12], %s1226_s21, %s1226_s21, %s1227_s22  }
  0x14   :  { %1215 = dma.done.wait [#allocation3], 32  }
  0x15   :  { %1216 = vsyncadd [#allocation3], 4294967264 }
  0x16   :  { %1217 = dma.done.wait [#allocation6], 544  }
  0x17   :  { %1218 = vsyncadd [#allocation6], 4294966752 }
  0x18   :  { %1219 = dma.done.wait [#allocation9], 16384  }
  0x19   :  { %1220 = vsyncadd [#allocation9], 4294950912 }
  0x1a   :  { %1221 = dma.done.wait [#allocation12], 8192  }
  0x1b   :  { %1222 = vsyncadd [#allocation12], 4294959104  ;;  %v129_v0 = vld [vmem:[#allocation5 + $0x10] sm:$0xff]  ;;  %v130_v1 = vld [vmem:[#allocation5 + $0x18] sm:$0xff]  ;;  %vm137_vm0 = vcmask 130048   ;;  %vm181_vm1 = vcmask 1041408  }
  0x1c   :  { %v127_v2 = vld [vmem:[#allocation5] sm:$0xff]  ;;  %155 = vmatpush.msra.mxu0 %v129_v0  ;;  %175 = vmatpush.msra.mxu1 %v130_v1  ;;  %v128_v3 = vld [vmem:[#allocation5 + $0x8] sm:$0xff]  ;;  %v126_v4 = vld [vmem:[#allocation2] sm:$0x3]  ;;  %s1003_s26 = sshll.u32 %s1887_s10, 4  ;;  %s1004_s26 = int_to_ptr.hbm [resolvable:$true] %s1003_s26 }
  0x1d   :  { %v1319_v5 = vld [vmem:[#allocation8 + $0xf0] sm:$0xff]  ;;  %v1324_v7 = vld [vmem:[#allocation8 + $0xf8] sm:$0xff]  ;;  %v1328_v9 = vld [vmem:[#allocation8 + $0xe0] sm:$0xff] }
  0x1e   :  { %276 = vmatpush.msra.mxu2 %v1319_v5  ;;  %v1322_v6 = vld [vmem:[#allocation8 + $0x1f0] sm:$0xff]  ;;  %156 = vmatpush.msra.mxu0 %v127_v2  ;;  %v1326_v8 = vld [vmem:[#allocation8 + $0x1f8] sm:$0xff]  ;;  %v1330_v10 = vld [vmem:[#allocation8 + $0x1e0] sm:$0xff] }
  0x1f   :  { %176 = vmatpush.msra.mxu1 %v128_v3  ;;  %1016 = vmatmul.msk.f32.vlgmr.msra.gmra.mxu0 %vm137_vm0, %v126_v4  ;;  %v1332_v11 = vld [vmem:[#allocation8 + $0xe8] sm:$0xff]  ;;  %v1338_v13 = vld [vmem:[#allocation8 + $0xd0] sm:$0xff]  ;;  %v1344_v15 = vld [vmem:[#allocation8 + $0xd8] sm:$0xff] }
  0x20   :  { %1017 = vmatmul.msk.f32.vlgmr.msra.gmra.mxu1 %vm137_vm0, %v126_v4  ;;  %296 = vmatpush.msra.mxu3 %v1322_v6  ;;  %v1336_v12 = vld [vmem:[#allocation8 + $0x1e8] sm:$0xff]  ;;  %v1342_v14 = vld [vmem:[#allocation8 + $0x1d0] sm:$0xff]  ;;  %v1348_v16 = vld [vmem:[#allocation8 + $0x1d8] sm:$0xff] }
  0x21   :  { %316 = vmatpush.msrb.mxu0 %v1324_v7  ;;  %336 = vmatpush.msrb.mxu1 %v1326_v8  ;;  %v1350_v17 = vld [vmem:[#allocation8 + $0xc0] sm:$0xff]  ;;  %v1356_v19 = vld [vmem:[#allocation8 + $0xc8] sm:$0xff]  ;;  %v1362_v21 = vld [vmem:[#allocation8 + $0xb0] sm:$0xff] }
  0x22   :  { %277 = vmatpush.msra.mxu2 %v1328_v9  ;;  %297 = vmatpush.msra.mxu3 %v1330_v10  ;;  %v1354_v18 = vld [vmem:[#allocation8 + $0x1c0] sm:$0xff]  ;;  %v1360_v20 = vld [vmem:[#allocation8 + $0x1c8] sm:$0xff]  ;;  %v1366_v22 = vld [vmem:[#allocation8 + $0x1b0] sm:$0xff] }
  0x23   :  { %317 = vmatpush.msrb.mxu0 %v1332_v11  ;;  %337 = vmatpush.msrb.mxu1 %v1336_v12  ;;  %v1368_v23 = vld [vmem:[#allocation8 + $0xb8] sm:$0xff]  ;;  %v1374_v25 = vld [vmem:[#allocation8 + $0xa0] sm:$0xff]  ;;  %v1380_v27 = vld [vmem:[#allocation8 + $0xa8] sm:$0xff] }
  0x24   :  { %278 = vmatpush.msra.mxu2 %v1338_v13  ;;  %298 = vmatpush.msra.mxu3 %v1342_v14  ;;  %v1372_v24 = vld [vmem:[#allocation8 + $0x1b8] sm:$0xff]  ;;  %v1378_v26 = vld [vmem:[#allocation8 + $0x1a0] sm:$0xff]  ;;  %v1384_v28 = vld [vmem:[#allocation8 + $0x1a8] sm:$0xff] }
  0x25   :  { %318 = vmatpush.msrb.mxu0 %v1344_v15  ;;  %338 = vmatpush.msrb.mxu1 %v1348_v16  ;;  %v1386_v29 = vld [vmem:[#allocation8 + $0x90] sm:$0xff]  ;;  %v1392_v31 = vld [vmem:[#allocation8 + $0x98] sm:$0xff]  ;;  %v1398_v33 = vld [vmem:[#allocation8 + $0x80] sm:$0xff] }
  0x26   :  { %279 = vmatpush.msra.mxu2 %v1350_v17  ;;  %299 = vmatpush.msra.mxu3 %v1354_v18  ;;  %v1390_v30 = vld [vmem:[#allocation8 + $0x190] sm:$0xff]  ;;  %v1396_v32 = vld [vmem:[#allocation8 + $0x198] sm:$0xff]  ;;  %v1402_v34 = vld [vmem:[#allocation8 + $0x180] sm:$0xff] }
  0x27   :  { %319 = vmatpush.msrb.mxu0 %v1356_v19  ;;  %339 = vmatpush.msrb.mxu1 %v1360_v20  ;;  %v1404_v35 = vld [vmem:[#allocation8 + $0x88] sm:$0xff]  ;;  %v1410_v37 = vld [vmem:[#allocation8 + $0x70] sm:$0xff]  ;;  %v1416_v39 = vld [vmem:[#allocation8 + $0x78] sm:$0xff] }
  0x28   :  { %280 = vmatpush.msra.mxu2 %v1362_v21  ;;  %300 = vmatpush.msra.mxu3 %v1366_v22  ;;  %v1408_v36 = vld [vmem:[#allocation8 + $0x188] sm:$0xff]  ;;  %v1414_v38 = vld [vmem:[#allocation8 + $0x170] sm:$0xff]  ;;  %v1420_v40 = vld [vmem:[#allocation8 + $0x178] sm:$0xff] }
  0x29   :  { %320 = vmatpush.msrb.mxu0 %v1368_v23  ;;  %340 = vmatpush.msrb.mxu1 %v1372_v24  ;;  %v1422_v41 = vld [vmem:[#allocation8 + $0x60] sm:$0xff]  ;;  %v1428_v43 = vld [vmem:[#allocation8 + $0x68] sm:$0xff]  ;;  %v1434_v45 = vld [vmem:[#allocation8 + $0x50] sm:$0xff] }
  0x2a   :  { %281 = vmatpush.msra.mxu2 %v1374_v25  ;;  %301 = vmatpush.msra.mxu3 %v1378_v26  ;;  %v1426_v42 = vld [vmem:[#allocation8 + $0x160] sm:$0xff]  ;;  %v1432_v44 = vld [vmem:[#allocation8 + $0x168] sm:$0xff]  ;;  %v1438_v46 = vld [vmem:[#allocation8 + $0x150] sm:$0xff] }
  0x2b   :  { %321 = vmatpush.msrb.mxu0 %v1380_v27  ;;  %341 = vmatpush.msrb.mxu1 %v1384_v28  ;;  %v1440_v47 = vld [vmem:[#allocation8 + $0x58] sm:$0xff]  ;;  %v1446_v49 = vld [vmem:[#allocation8 + $0x40] sm:$0xff]  ;;  %v1452_v51 = vld [vmem:[#allocation8 + $0x48] sm:$0xff] }
  0x2c   :  { %282 = vmatpush.msra.mxu2 %v1386_v29  ;;  %302 = vmatpush.msra.mxu3 %v1390_v30  ;;  %v1444_v48 = vld [vmem:[#allocation8 + $0x158] sm:$0xff]  ;;  %v1450_v50 = vld [vmem:[#allocation8 + $0x140] sm:$0xff]  ;;  %v1456_v52 = vld [vmem:[#allocation8 + $0x148] sm:$0xff] }
  0x2d   :  { %322 = vmatpush.msrb.mxu0 %v1392_v31  ;;  %342 = vmatpush.msrb.mxu1 %v1396_v32  ;;  %v1458_v53 = vld [vmem:[#allocation8 + $0x30] sm:$0xff]  ;;  %v1464_v55 = vld [vmem:[#allocation8 + $0x38] sm:$0xff]  ;;  %v1470_v57 = vld [vmem:[#allocation8 + $0x20] sm:$0xff] }
  0x2e   :  { %283 = vmatpush.msra.mxu2 %v1398_v33  ;;  %303 = vmatpush.msra.mxu3 %v1402_v34  ;;  %v1462_v54 = vld [vmem:[#allocation8 + $0x130] sm:$0xff]  ;;  %v1468_v56 = vld [vmem:[#allocation8 + $0x138] sm:$0xff]  ;;  %v1474_v58 = vld [vmem:[#allocation8 + $0x120] sm:$0xff] }
  0x2f   :  { %323 = vmatpush.msrb.mxu0 %v1404_v35  ;;  %343 = vmatpush.msrb.mxu1 %v1408_v36  ;;  %v1476_v59 = vld [vmem:[#allocation8 + $0x28] sm:$0xff]  ;;  %v1482_v61 = vld [vmem:[#allocation8 + $0x10] sm:$0xff]  ;;  %v1488_v63 = vld [vmem:[#allocation8 + $0x18] sm:$0xff] }
  0x30   :  { %284 = vmatpush.msra.mxu2 %v1410_v37  ;;  %304 = vmatpush.msra.mxu3 %v1414_v38  ;;  %v1480_v60 = vld [vmem:[#allocation8 + $0x128] sm:$0xff]  ;;  %v1486_v62 = vld [vmem:[#allocation8 + $0x110] sm:$0xff]  ;;  %v1492_v0 = vld [vmem:[#allocation8 + $0x118] sm:$0xff] }
  0x31   :  { %324 = vmatpush.msrb.mxu0 %v1416_v39  ;;  %344 = vmatpush.msrb.mxu1 %v1420_v40  ;;  %v1494_v1 = vld [vmem:[#allocation8] sm:$0xff]  ;;  %v1500_v3 = vld [vmem:[#allocation8 + $0x8] sm:$0xff] }
  0x32   :  { %285 = vmatpush.msra.mxu2 %v1422_v41  ;;  %305 = vmatpush.msra.mxu3 %v1426_v42  ;;  %v1498_v2 = vld [vmem:[#allocation8 + $0x100] sm:$0xff]  ;;  %v1504_v4 = vld [vmem:[#allocation8 + $0x108] sm:$0xff] }
  0x33   :  { %325 = vmatpush.msrb.mxu0 %v1428_v43  ;;  %345 = vmatpush.msrb.mxu1 %v1432_v44 }
  0x34   :  { %286 = vmatpush.msra.mxu2 %v1434_v45  ;;  %306 = vmatpush.msra.mxu3 %v1438_v46 }
  0x35   :  { %326 = vmatpush.msrb.mxu0 %v1440_v47  ;;  %346 = vmatpush.msrb.mxu1 %v1444_v48 }
  0x36   :  { %287 = vmatpush.msra.mxu2 %v1446_v49  ;;  %307 = vmatpush.msra.mxu3 %v1450_v50 }
  0x37   :  { %327 = vmatpush.msrb.mxu0 %v1452_v51  ;;  %347 = vmatpush.msrb.mxu1 %v1456_v52 }
  0x38   :  { %288 = vmatpush.msra.mxu2 %v1458_v53  ;;  %308 = vmatpush.msra.mxu3 %v1462_v54 }
  0x39   :  { %328 = vmatpush.msrb.mxu0 %v1464_v55  ;;  %348 = vmatpush.msrb.mxu1 %v1468_v56 }
  0x3a   :  { %289 = vmatpush.msra.mxu2 %v1470_v57  ;;  %309 = vmatpush.msra.mxu3 %v1474_v58 }
  0x3b   :  { %329 = vmatpush.msrb.mxu0 %v1476_v59  ;;  %349 = vmatpush.msrb.mxu1 %v1480_v60 }
  0x3c   :  { %290 = vmatpush.msra.mxu2 %v1482_v61  ;;  %310 = vmatpush.msra.mxu3 %v1486_v62 }
  0x3d   :  { %330 = vmatpush.msrb.mxu0 %v1488_v63  ;;  %350 = vmatpush.msrb.mxu1 %v1492_v0 }
  0x3e   :  { %291 = vmatpush.msra.mxu2 %v1494_v1  ;;  %311 = vmatpush.msra.mxu3 %v1498_v2 }
  0x3f   :  { %331 = vmatpush.msrb.mxu0 %v1500_v3  ;;  %351 = vmatpush.msrb.mxu1 %v1504_v4 }
  0x40   :  { %356 = vmatpush.msrb.mxu2 %v1319_v5  ;;  %376 = vmatpush.msrb.mxu3 %v1322_v6  ;;  %v131_v5 = vld [vmem:[#allocation7] sm:$0x3] }
  0x41   :  { %396 = vmatpush.msra.mxu0 %v1324_v7  ;;  %416 = vmatpush.msra.mxu1 %v1326_v8  ;;  %v133_v6 = vperm.slane %v131_v5, 0  ;;  %v134_v7 = vperm.slane %v131_v5, 1 }
  0x42   :  { %357 = vmatpush.msrb.mxu2 %v1328_v9  ;;  %377 = vmatpush.msrb.mxu3 %v1330_v10 }
  0x43   :  { %397 = vmatpush.msra.mxu0 %v1332_v11  ;;  %417 = vmatpush.msra.mxu1 %v1336_v12 }
  0x44   :  { %358 = vmatpush.msrb.mxu2 %v1338_v13  ;;  %378 = vmatpush.msrb.mxu3 %v1342_v14 }
  0x45   :  { %398 = vmatpush.msra.mxu0 %v1344_v15  ;;  %418 = vmatpush.msra.mxu1 %v1348_v16 }
  0x46   :  { %359 = vmatpush.msrb.mxu2 %v1350_v17  ;;  %379 = vmatpush.msrb.mxu3 %v1354_v18 }
  0x47   :  { %399 = vmatpush.msra.mxu0 %v1356_v19  ;;  %419 = vmatpush.msra.mxu1 %v1360_v20 }
  0x48   :  { %360 = vmatpush.msrb.mxu2 %v1362_v21  ;;  %380 = vmatpush.msrb.mxu3 %v1366_v22 }
  0x49   :  { %400 = vmatpush.msra.mxu0 %v1368_v23  ;;  %420 = vmatpush.msra.mxu1 %v1372_v24 }
  0x4a   :  { %361 = vmatpush.msrb.mxu2 %v1374_v25  ;;  %381 = vmatpush.msrb.mxu3 %v1378_v26 }
  0x4b   :  { %401 = vmatpush.msra.mxu0 %v1380_v27  ;;  %421 = vmatpush.msra.mxu1 %v1384_v28 }
  0x4c   :  { %362 = vmatpush.msrb.mxu2 %v1386_v29  ;;  %382 = vmatpush.msrb.mxu3 %v1390_v30 }
  0x4d   :  { %402 = vmatpush.msra.mxu0 %v1392_v31  ;;  %422 = vmatpush.msra.mxu1 %v1396_v32 }
  0x4e   :  { %363 = vmatpush.msrb.mxu2 %v1398_v33  ;;  %383 = vmatpush.msrb.mxu3 %v1402_v34 }
  0x4f   :  { %403 = vmatpush.msra.mxu0 %v1404_v35  ;;  %423 = vmatpush.msra.mxu1 %v1408_v36 }
  0x50   :  { %364 = vmatpush.msrb.mxu2 %v1410_v37  ;;  %384 = vmatpush.msrb.mxu3 %v1414_v38 }
  0x51   :  { %404 = vmatpush.msra.mxu0 %v1416_v39  ;;  %424 = vmatpush.msra.mxu1 %v1420_v40 }
  0x52   :  { %365 = vmatpush.msrb.mxu2 %v1422_v41  ;;  %385 = vmatpush.msrb.mxu3 %v1426_v42  ;;  %v566_v42 = vld [vmem:[#allocation10 + $0x1f0] sm:$0xff] }
  0x53   :  { %405 = vmatpush.msra.mxu0 %v1428_v43  ;;  %425 = vmatpush.msra.mxu1 %v1432_v44  ;;  %v567_v43 = vld [vmem:[#allocation10 + $0x1f8] sm:$0xff] }
  0x54   :  { %366 = vmatpush.msrb.mxu2 %v1434_v45  ;;  %386 = vmatpush.msrb.mxu3 %v1438_v46  ;;  %v564_v46 = vld [vmem:[#allocation10 + $0x1e0] sm:$0xff] }
  0x55   :  { %406 = vmatpush.msra.mxu0 %v1440_v47  ;;  %426 = vmatpush.msra.mxu1 %v1444_v48  ;;  %v565_v47 = vld [vmem:[#allocation10 + $0x1e8] sm:$0xff]  ;;  %v562_v48 = vld [vmem:[#allocation10 + $0x1d0] sm:$0xff] }
  0x56   :  { %367 = vmatpush.msrb.mxu2 %v1446_v49  ;;  %387 = vmatpush.msrb.mxu3 %v1450_v50  ;;  %v563_v49 = vld [vmem:[#allocation10 + $0x1d8] sm:$0xff]  ;;  %v534_v50 = vld [vmem:[#allocation10 + $0xf0] sm:$0xff] }
  0x57   :  { %407 = vmatpush.msra.mxu0 %v1452_v51  ;;  %427 = vmatpush.msra.mxu1 %v1456_v52  ;;  %v560_v51 = vld [vmem:[#allocation10 + $0x1c0] sm:$0xff] }
  0x58   :  { %368 = vmatpush.msrb.mxu2 %v1458_v53  ;;  %388 = vmatpush.msrb.mxu3 %v1462_v54 }
  0x59   :  { %408 = vmatpush.msra.mxu0 %v1464_v55  ;;  %428 = vmatpush.msra.mxu1 %v1468_v56  ;;  %v535_v55 = vld [vmem:[#allocation10 + $0xf8] sm:$0xff]  ;;  %v561_v56 = vld [vmem:[#allocation10 + $0x1c8] sm:$0xff] }
  0x5a   :  { %369 = vmatpush.msrb.mxu2 %v1470_v57  ;;  %389 = vmatpush.msrb.mxu3 %v1474_v58  ;;  %v532_v57 = vld [vmem:[#allocation10 + $0xe0] sm:$0xff]  ;;  %v558_v58 = vld [vmem:[#allocation10 + $0x1b0] sm:$0xff] }
  0x5b   :  { %409 = vmatpush.msra.mxu0 %v1476_v59  ;;  %429 = vmatpush.msra.mxu1 %v1480_v60  ;;  %v533_v59 = vld [vmem:[#allocation10 + $0xe8] sm:$0xff]  ;;  %v559_v60 = vld [vmem:[#allocation10 + $0x1b8] sm:$0xff] }
  0x5c   :  { %370 = vmatpush.msrb.mxu2 %v1482_v61  ;;  %390 = vmatpush.msrb.mxu3 %v1486_v62 }
  0x5d   :  { %410 = vmatpush.msra.mxu0 %v1488_v63  ;;  %430 = vmatpush.msra.mxu1 %v1492_v0  ;;  %v530_v63 = vld [vmem:[#allocation10 + $0xd0] sm:$0xff]  ;;  %v556_v0 = vld [vmem:[#allocation10 + $0x1a0] sm:$0xff] }
  0x5e   :  { %371 = vmatpush.msrb.mxu2 %v1494_v1  ;;  %391 = vmatpush.msrb.mxu3 %v1498_v2  ;;  %v531_v1 = vld [vmem:[#allocation10 + $0xd8] sm:$0xff] }
  0x5f   :  { %411 = vmatpush.msra.mxu0 %v1500_v3  ;;  %431 = vmatpush.msra.mxu1 %v1504_v4  ;;  %v557_v4 = vld [vmem:[#allocation10 + $0x1a8] sm:$0xff] }
  0x9c   :  { %v158_v8 = vpop.f32.mrf.mxu0 }
  0x9d   :  { %v178_v9 = vpop.f32.mrf.mxu1  ;;  %v1575_v10 = vadd.f32 %v158_v8, %v133_v6  ;;  %v528_v6 = vld [vmem:[#allocation10 + $0xc0] sm:$0xff]  ;;  %v529_v8 = vld [vmem:[#allocation10 + $0xc8] sm:$0xff] }
  0x9e   :  { %v1577_v11 = vadd.f32 %v178_v9, %v134_v7  ;;  %v554_v7 = vld [vmem:[#allocation10 + $0x190] sm:$0xff] }
  0x9f   :  { %v182_v12 = vsel %vm181_vm1, %v1575_v10, 0.0  ;;  %v196_v13 = vmul.f32 %v1575_v10, %v1575_v10 }
  0xa0   :  { %v189_v14 = vsel %vm181_vm1, %v1577_v11, 0.0  ;;  %v197_v15 = vmul.f32 %v1577_v11, %v1577_v11  ;;  %v183_v16 = vrot.slane %v182_v12, 4 }
  0xa1   :  { %v190_v17 = vrot.slane %v189_v14, 4  ;;  %v198_v18 = vsel %vm181_vm1, %v196_v13, 0.0  ;;  %v526_v13 = vld [vmem:[#allocation10 + $0xb0] sm:$0xff] }
  0xa2   :  { %v205_v19 = vsel %vm181_vm1, %v197_v15, 0.0  ;;  %v199_v20 = vrot.slane %v198_v18, 4  ;;  %v184_v22 = vadd.f32 %v183_v16, %v182_v12  ;;  %v555_v12 = vld [vmem:[#allocation10 + $0x198] sm:$0xff] }
  0xa3   :  { %v206_v21 = vrot.slane %v205_v19, 4  ;;  %v191_v23 = vadd.f32 %v190_v17, %v189_v14  ;;  %v552_v14 = vld [vmem:[#allocation10 + $0x180] sm:$0xff]  ;;  %v527_v15 = vld [vmem:[#allocation10 + $0xb8] sm:$0xff] }
  0xa4   :  { %v185_v24 = vrot.slane %v184_v22, 2  ;;  %v200_v26 = vadd.f32 %v199_v20, %v198_v18  ;;  %v524_v20 = vld [vmem:[#allocation10 + $0xa0] sm:$0xff] }
  0xa5   :  { %v192_v25 = vrot.slane %v191_v23, 2  ;;  %v207_v27 = vadd.f32 %v206_v21, %v205_v19  ;;  %v553_v19 = vld [vmem:[#allocation10 + $0x188] sm:$0xff]  ;;  %v550_v21 = vld [vmem:[#allocation10 + $0x170] sm:$0xff] }
  0xa6   :  { %v186_v28 = vadd.f32 %v185_v24, %v184_v22  ;;  %v201_v30 = vrot.slane %v200_v26, 2  ;;  %v525_v24 = vld [vmem:[#allocation10 + $0xa8] sm:$0xff] }
  0xa7   :  { %v193_v29 = vadd.f32 %v192_v25, %v191_v23  ;;  %v208_v31 = vrot.slane %v207_v27, 2  ;;  %v551_v25 = vld [vmem:[#allocation10 + $0x178] sm:$0xff] }
  0xa8   :  { %v187_v32 = vrot.slane %v186_v28, 1  ;;  %v202_v36 = vadd.f32 %v201_v30, %v200_v26  ;;  %v522_v26 = vld [vmem:[#allocation10 + $0x90] sm:$0xff] }
  0xa9   :  { %v194_v33 = vrot.slane %v193_v29, 1  ;;  %v209_v37 = vadd.f32 %v208_v31, %v207_v27  ;;  %v548_v27 = vld [vmem:[#allocation10 + $0x160] sm:$0xff] }
  0xaa   :  { %v188_v34 = vadd.f32 %v187_v32, %v186_v28  ;;  %v203_v38 = vrot.slane %v202_v36, 1  ;;  %v523_v28 = vld [vmem:[#allocation10 + $0x98] sm:$0xff]  ;;  %v520_v31 = vld [vmem:[#allocation10 + $0x80] sm:$0xff]  ;;  %v546_v32 = vld [vmem:[#allocation10 + $0x150] sm:$0xff] }
  0xab   :  { %v195_v35 = vadd.f32 %v194_v33, %v193_v29  ;;  %v210_v39 = vrot.slane %v209_v37, 1  ;;  %v549_v29 = vld [vmem:[#allocation10 + $0x168] sm:$0xff] }
  0xac   :  { %292 = vmatmul.f32.vlgmr.msra.gmra.mxu2 %v188_v34  ;;  %332 = vmatmul.f32.vlgmr.msrb.gmra.mxu0 %v188_v34  ;;  %v204_v40 = vadd.f32 %v203_v38, %v202_v36  ;;  %v521_v33 = vld [vmem:[#allocation10 + $0x88] sm:$0xff]  ;;  %v547_v34 = vld [vmem:[#allocation10 + $0x158] sm:$0xff]  ;;  %v518_v36 = vld [vmem:[#allocation10 + $0x70] sm:$0xff] }
  0xad   :  { %312 = vmatmul.f32.vlgmr.msra.gmra.mxu3 %v195_v35  ;;  %352 = vmatmul.f32.vlgmr.msrb.gmra.mxu1 %v195_v35  ;;  %v211_v41 = vadd.f32 %v210_v39, %v209_v37  ;;  %v544_v37 = vld [vmem:[#allocation10 + $0x140] sm:$0xff]  ;;  %v519_v38 = vld [vmem:[#allocation10 + $0x78] sm:$0xff]  ;;  %v545_v39 = vld [vmem:[#allocation10 + $0x148] sm:$0xff] }
  0xae   :  { %588 = vmatpush.msra.mxu3 %v566_v42  ;;  %628 = vmatpush.msrb.mxu1 %v567_v43  ;;  %v517_v43 = vld [vmem:[#allocation10 + $0x68] sm:$0xff] }
  0xaf   :  { %568 = vmatpush.msra.mxu2 %v534_v50  ;;  %608 = vmatpush.msrb.mxu0 %v535_v55  ;;  %v539_v55 = vld [vmem:[#allocation10 + $0x118] sm:$0xff] }
  0xb0   :  { %589 = vmatpush.msra.mxu3 %v564_v46  ;;  %629 = vmatpush.msrb.mxu1 %v565_v47  ;;  %v514_v46 = vld [vmem:[#allocation10 + $0x50] sm:$0xff]  ;;  %v540_v47 = vld [vmem:[#allocation10 + $0x120] sm:$0xff] }
  0xb1   :  { %569 = vmatpush.msra.mxu2 %v532_v57  ;;  %609 = vmatpush.msrb.mxu0 %v533_v59  ;;  %v536_v59 = vld [vmem:[#allocation10 + $0x100] sm:$0xff] }
  0xb2   :  { %590 = vmatpush.msra.mxu3 %v562_v48  ;;  %630 = vmatpush.msrb.mxu1 %v563_v49  ;;  %v515_v48 = vld [vmem:[#allocation10 + $0x58] sm:$0xff]  ;;  %v541_v49 = vld [vmem:[#allocation10 + $0x128] sm:$0xff] }
  0xb3   :  { %570 = vmatpush.msra.mxu2 %v530_v63  ;;  %610 = vmatpush.msrb.mxu0 %v531_v1  ;;  %v1612_v1 = vld [vmem:[%s1881_s4] sm:$0x3] }
  0xb4   :  { %372 = vmatmul.f32.vlgmr.msrb.gmra.mxu2 %v204_v40  ;;  %412 = vmatmul.f32.vlgmr.msra.gmra.mxu0 %v204_v40  ;;  %v516_v40 = vld [vmem:[#allocation10 + $0x60] sm:$0xff] }
  0xb5   :  { %392 = vmatmul.f32.vlgmr.msrb.gmra.mxu3 %v211_v41  ;;  %432 = vmatmul.f32.vlgmr.msra.gmra.mxu1 %v211_v41  ;;  %v542_v41 = vld [vmem:[#allocation10 + $0x130] sm:$0xff] }
  0xb6   :  { %591 = vmatpush.msra.mxu3 %v560_v51  ;;  %631 = vmatpush.msrb.mxu1 %v561_v56  ;;  %v512_v51 = vld [vmem:[#allocation10 + $0x40] sm:$0xff] }
  0xb7   :  { %571 = vmatpush.msra.mxu2 %v528_v6  ;;  %611 = vmatpush.msrb.mxu0 %v529_v8  ;;  %v509_v6 = vld [vmem:[#allocation10 + $0x28] sm:$0xff]  ;;  %v507_v8 = vld [vmem:[#allocation10 + $0x18] sm:$0xff] }
  0xb8   :  { %592 = vmatpush.msra.mxu3 %v558_v58  ;;  %632 = vmatpush.msrb.mxu1 %v559_v60  ;;  %v510_v58 = vld [vmem:[#allocation10 + $0x30] sm:$0xff] }
  0xb9   :  { %572 = vmatpush.msra.mxu2 %v526_v13  ;;  %612 = vmatpush.msrb.mxu0 %v527_v15  ;;  %v1621_v13 = vld [vmem:[%s1882_s5] sm:$0x3] }
  0xba   :  { %593 = vmatpush.msra.mxu3 %v556_v0  ;;  %633 = vmatpush.msrb.mxu1 %v557_v4  ;;  %v508_v4 = vld [vmem:[#allocation10 + $0x20] sm:$0xff] }
  0xbb   :  { %573 = vmatpush.msra.mxu2 %v524_v20  ;;  %613 = vmatpush.msrb.mxu0 %v525_v24  ;;  %v1633_v24 = vld [vmem:[#allocation11 + $0x1e0] sm:$0xff] }
  0xbc   :  { %594 = vmatpush.msra.mxu3 %v554_v7  ;;  %634 = vmatpush.msrb.mxu1 %v555_v12  ;;  %v506_v7 = vld [vmem:[#allocation10 + $0x10] sm:$0xff]  ;;  %v473_v12 = vperm.slane %v1612_v1, 1 }
  0xbd   :  { %574 = vmatpush.msra.mxu2 %v522_v26  ;;  %614 = vmatpush.msrb.mxu0 %v523_v28  ;;  %v1642_v28 = vld [vmem:[#allocation11 + $0xf0] sm:$0xff] }
  0xbe   :  { %595 = vmatpush.msra.mxu3 %v552_v14  ;;  %635 = vmatpush.msrb.mxu1 %v553_v19  ;;  %v504_v14 = vld [vmem:[#allocation10] sm:$0xff] }
  0xbf   :  { %575 = vmatpush.msra.mxu2 %v520_v31  ;;  %615 = vmatpush.msrb.mxu0 %v521_v33  ;;  %v1649_v33 = vld [vmem:[#allocation11 + $0x1d8] sm:$0xff] }
  0xc0   :  { %596 = vmatpush.msra.mxu3 %v550_v21  ;;  %636 = vmatpush.msrb.mxu1 %v551_v25  ;;  %v481_v21 = vperm.slane %v1621_v13, 1 }
  0xc1   :  { %576 = vmatpush.msra.mxu2 %v518_v36  ;;  %616 = vmatpush.msrb.mxu0 %v519_v38  ;;  %v1657_v36 = vld [vmem:[#allocation11 + $0x1c0] sm:$0xff] }
  0xc2   :  { %597 = vmatpush.msra.mxu3 %v548_v27  ;;  %637 = vmatpush.msrb.mxu1 %v549_v29  ;;  %v1640_v27 = vld [vmem:[#allocation11 + $0x1d0] sm:$0xff]  ;;  %v1644_v29 = vld [vmem:[#allocation11 + $0xf8] sm:$0xff] }
  0xc3   :  { %577 = vmatpush.msra.mxu2 %v516_v40  ;;  %617 = vmatpush.msrb.mxu0 %v517_v43  ;;  %v1666_v40 = vld [vmem:[#allocation11 + $0x1c8] sm:$0xff]  ;;  %v1673_v43 = vld [vmem:[#allocation11 + $0x1b0] sm:$0xff] }
  0xc4   :  { %598 = vmatpush.msra.mxu3 %v546_v32  ;;  %638 = vmatpush.msrb.mxu1 %v547_v34  ;;  %v472_v32 = vperm.slane %v1612_v1, 0  ;;  %v1652_v34 = vld [vmem:[#allocation11 + $0xe0] sm:$0xff]  ;;  %v1722_v1 = vld [vmem:[#allocation11 + $0x188] sm:$0xff] }
  0xc5   :  { %578 = vmatpush.msra.mxu2 %v514_v46  ;;  %618 = vmatpush.msrb.mxu0 %v515_v48  ;;  %v1679_v46 = vld [vmem:[#allocation11 + $0x1b8] sm:$0xff] }
  0xc6   :  { %599 = vmatpush.msra.mxu3 %v544_v37  ;;  %639 = vmatpush.msrb.mxu1 %v545_v39  ;;  %v1662_v37 = vld [vmem:[#allocation11 + $0xd0] sm:$0xff]  ;;  %v480_v39 = vperm.slane %v1621_v13, 0 }
  0xc7   :  { %579 = vmatpush.msra.mxu2 %v512_v51 }
  0xc8   :  { %600 = vmatpush.msra.mxu3 %v542_v41  ;;  %v1669_v41 = vld [vmem:[#allocation11 + $0xd8] sm:$0xff] }
  0xc9   :  { %580 = vmatpush.msra.mxu2 %v510_v58 }
  0xca   :  { %601 = vmatpush.msra.mxu3 %v540_v47  ;;  %v1682_v47 = vld [vmem:[#allocation11 + $0xc8] sm:$0xff] }
  0xcb   :  { %581 = vmatpush.msra.mxu2 %v508_v4  ;;  %v1728_v4 = vld [vmem:[#allocation11 + $0x170] sm:$0xff] }
  0xcd   :  { %582 = vmatpush.msra.mxu2 %v506_v7 }
  0xcf   :  { %583 = vmatpush.msra.mxu2 %v504_v14  ;;  %v1748_v14 = vld [vmem:[#allocation11 + $0x168] sm:$0xff] }
  0xd1   :  { %742 = vmatpush.msrb.mxu2 %v1642_v28 }
  0xd3   :  { %743 = vmatpush.msrb.mxu2 %v1652_v34 }
  0xd5   :  { %744 = vmatpush.msrb.mxu2 %v1662_v37 }
 0x129   :  { %v333_v44 = vpop.f32.mrf.mxu0 }
 0x12a   :  { %v353_v45 = vpop.f32.mrf.mxu1 }
 0x12b   :  { %v1589_v52 = vadd.f32 %v353_v45, %v333_v44  ;;  %v543_v44 = vld [vmem:[#allocation10 + $0x138] sm:$0xff] }
 0x12c   :  { %640 = vmatpush.msrb.mxu1 %v543_v44  ;;  %v1676_v44 = vld [vmem:[#allocation11 + $0xc0] sm:$0xff] }
 0x12d   :  { %v437_v2 = vmul.f32 %v1589_v52, %v1589_v52  ;;  %v441_v0 = vperm.slane %v1589_v52, 0  ;;  %745 = vmatpush.msrb.mxu2 %v1676_v44 }
 0x12e   :  { %641 = vmatpush.msrb.mxu1 %v541_v49  ;;  %v1686_v49 = vld [vmem:[#allocation11 + $0x1a0] sm:$0xff] }
 0x12f   :  { %v293_v53 = vpop.f32.mrf.mxu2  ;;  %v443_v15 = vsub.f32 %v1577_v11, %v441_v0  ;;  %v1631_v11 = vld [vmem:[#allocation11 + $0x1f8] sm:$0xff] }
 0x130   :  { %v313_v54 = vpop.f32.mrf.mxu3  ;;  %642 = vmatpush.msrb.mxu1 %v539_v55 }
 0x131   :  { %v413_v61 = vpop.f32.mrf.mxu0  ;;  %v1593_v5 = vadd.f32 %v313_v54, %v293_v53  ;;  %v538_v53 = vld [vmem:[#allocation10 + $0x110] sm:$0xff]  ;;  %v513_v54 = vld [vmem:[#allocation10 + $0x48] sm:$0xff] }
 0x132   :  { %v433_v62 = vpop.f32.mrf.mxu1  ;;  %602 = vmatpush.msra.mxu3 %v538_v53  ;;  %619 = vmatpush.msrb.mxu0 %v513_v54  ;;  %v1694_v53 = vld [vmem:[#allocation11 + $0x1a8] sm:$0xff]  ;;  %v1697_v54 = vld [vmem:[#allocation11 + $0xb8] sm:$0xff] }
 0x133   :  { %v434_v3 = vadd.f32 %v433_v62, %v413_v61  ;;  %v436_v22 = vmul.f32 %v1593_v5, %v1593_v5  ;;  %v511_v61 = vld [vmem:[#allocation10 + $0x38] sm:$0xff]  ;;  %v537_v62 = vld [vmem:[#allocation10 + $0x108] sm:$0xff]  ;;  %v440_v19 = vperm.slane %v1593_v5, 0 }
 0x134   :  { %603 = vmatpush.msra.mxu3 %v536_v59  ;;  %620 = vmatpush.msrb.mxu0 %v511_v61  ;;  %v1636_v5 = vld [vmem:[#allocation11 + $0x1e8] sm:$0xff]  ;;  %v1708_v59 = vld [vmem:[#allocation11 + $0x198] sm:$0xff] }
 0x135   :  { %v439_v9 = vsub.f32 %v434_v3, %v437_v2  ;;  %643 = vmatpush.msrb.mxu1 %v537_v62  ;;  %v1715_v62 = vld [vmem:[#allocation11 + $0x180] sm:$0xff] }
 0x136   :  { %621 = vmatpush.msrb.mxu0 %v509_v6  ;;  %v1731_v6 = vld [vmem:[#allocation11 + $0x80] sm:$0xff] }
 0x137   :  { %v1595_v16 = vadd.f32 1e-05, %v439_v9  ;;  %v373_v17 = vpop.f32.mrf.mxu2  ;;  %802 = vmatpush.msra.mxu1 %v1631_v11 }
 0x138   :  { %v393_v18 = vpop.f32.mrf.mxu3  ;;  %622 = vmatpush.msrb.mxu0 %v507_v8  ;;  %v1738_v8 = vld [vmem:[#allocation11 + $0x88] sm:$0xff] }
 0x139   :  { %v394_v23 = vadd.f32 %v393_v18, %v373_v17  ;;  %1027 = vrsqrt.f32 %v1595_v16  ;;  %vm462_vm3 = vweird.f32 %v1595_v16  ;;  %v505_v18 = vld [vmem:[#allocation10 + $0x8] sm:$0xff]  ;;  %803 = vmatpush.msra.mxu1 %v1636_v5 }
 0x13a   :  { %623 = vmatpush.msrb.mxu0 %v505_v18 }
 0x13b   :  { %v438_v30 = vsub.f32 %v394_v23, %v436_v22  ;;  %v1629_v23 = vld [vmem:[#allocation11 + $0x1f0] sm:$0xff]  ;;  %804 = vmatpush.msra.mxu1 %v1649_v33 }
 0x13c   :  { %762 = vmatpush.msrb.mxu3 %v1629_v23  ;;  %782 = vmatpush.msra.mxu0 %v1644_v29 }
 0x13d   :  { %v1600_v35 = vadd.f32 1e-05, %v438_v30  ;;  %v442_v30 = vsub.f32 %v1575_v10, %v440_v19  ;;  %v1660_v10 = vld [vmem:[#allocation11 + $0xe8] sm:$0xff]  ;;  %805 = vmatpush.msra.mxu1 %v1666_v40  ;;  %v1760_v19 = vld [vmem:[#allocation11 + $0x158] sm:$0xff] }
 0x13e   :  { %763 = vmatpush.msrb.mxu3 %v1633_v24  ;;  %783 = vmatpush.msra.mxu0 %v1660_v10 }
 0x13f   :  { %1029 = vrsqrt.f32 %v1600_v35  ;;  %v1028_v42 = vpop.eup %1027  ;;  %vm452_vm6 = vweird.f32 %v1600_v35  ;;  %806 = vmatpush.msra.mxu1 %v1679_v46 }
 0x140   :  { %v457_v45 = vmul.f32 %v1028_v42, %v1595_v16  ;;  %vm463_vm2 = vweird.f32 %v1028_v42  ;;  %764 = vmatpush.msrb.mxu3 %v1640_v27  ;;  %784 = vmatpush.msra.mxu0 %v1669_v41 }
 0x141   :  { %vm464_vm4 = vmor %vm462_vm3, %vm463_vm2  ;;  %807 = vmatpush.msra.mxu1 %v1694_v53 }
 0x142   :  { %v458_v50 = vmul.f32 %v1028_v42, %v457_v45  ;;  %765 = vmatpush.msrb.mxu3 %v1657_v36  ;;  %785 = vmatpush.msra.mxu0 %v1682_v47 }
 0x143   :  { %808 = vmatpush.msra.mxu1 %v1708_v59 }
 0x144   :  { %v459_v57 = vmul.f32 0.5, %v458_v50  ;;  %v1689_v50 = vld [vmem:[#allocation11 + $0xb0] sm:$0xff]  ;;  %766 = vmatpush.msrb.mxu3 %v1673_v43  ;;  %786 = vmatpush.msra.mxu0 %v1697_v54 }
 0x145   :  { %v1604_v56 = vpop.eup %1029  ;;  %746 = vmatpush.msrb.mxu2 %v1689_v50  ;;  %809 = vmatpush.msra.mxu1 %v1722_v1 }
 0x146   :  { %v447_v60 = vmul.f32 %v1604_v56, %v1600_v35  ;;  %v460_v63 = vsub.f32 1.5, %v459_v57  ;;  %vm453_vm5 = vweird.f32 %v1604_v56  ;;  %v1704_v57 = vld [vmem:[#allocation11 + $0xa0] sm:$0xff]  ;;  %767 = vmatpush.msrb.mxu3 %v1686_v49 }
 0x147   :  { %vm454_vm7 = vmor %vm452_vm6, %vm453_vm5  ;;  %747 = vmatpush.msrb.mxu2 %v1704_v57 }
 0x148   :  { %v448_v2 = vmul.f32 %v1604_v56, %v447_v60  ;;  %v461_v3 = vmul.f32 %v1028_v42, %v460_v63  ;;  %v1711_v60 = vld [vmem:[#allocation11 + $0xa8] sm:$0xff]  ;;  %v1718_v63 = vld [vmem:[#allocation11 + $0x90] sm:$0xff] }
 0x149   :  { %787 = vmatpush.msra.mxu0 %v1711_v60  ;;  %748 = vmatpush.msrb.mxu2 %v1718_v63 }
 0x14a   :  { %v449_v52 = vmul.f32 0.5, %v448_v2  ;;  %v465_v9 = vsel %vm464_vm4, %v1028_v42, %v461_v3  ;;  %v1725_v2 = vld [vmem:[#allocation11 + $0x98] sm:$0xff] }
 0x14b   :  { %v467_v16 = vperm.slane %v465_v9, 0  ;;  %v1741_v9 = vld [vmem:[#allocation11 + $0x160] sm:$0xff]  ;;  %788 = vmatpush.msra.mxu0 %v1725_v2  ;;  %749 = vmatpush.msrb.mxu2 %v1731_v6 }
 0x14c   :  { %v450_v17 = vsub.f32 1.5, %v449_v52  ;;  %v1735_v52 = vld [vmem:[#allocation11 + $0x178] sm:$0xff] }
 0x14d   :  { %v469_v20 = vmul.f32 %v467_v16, %v443_v15  ;;  %v1751_v15 = vld [vmem:[#allocation11 + $0x78] sm:$0xff]  ;;  %810 = vmatpush.msra.mxu1 %v1735_v52  ;;  %v1754_v16 = vld [vmem:[#allocation11 + $0x150] sm:$0xff]  ;;  %789 = vmatpush.msra.mxu0 %v1738_v8 }
 0x14e   :  { %v451_v22 = vmul.f32 %v1604_v56, %v450_v17  ;;  %v1757_v17 = vld [vmem:[#allocation11 + $0x60] sm:$0xff] }
 0x14f   :  { %v477_v25 = vmul.f32 %v473_v12, %v469_v20  ;;  %v1744_v12 = vld [vmem:[#allocation11 + $0x70] sm:$0xff]  ;;  %v1763_v20 = vld [vmem:[#allocation11 + $0x68] sm:$0xff]  ;;  %811 = vmatpush.msra.mxu1 %v1748_v14  ;;  %790 = vmatpush.msra.mxu0 %v1751_v15 }
 0x150   :  { %v455_v26 = vsel %vm454_vm7, %v1604_v56, %v451_v22  ;;  %v1701_v56 = vld [vmem:[#allocation11 + $0x190] sm:$0xff]  ;;  %750 = vmatpush.msrb.mxu2 %v1744_v12 }
 0x151   :  { %v466_v31 = vperm.slane %v455_v26, 0  ;;  %v1654_v35 = vadd.f32 %v481_v21, %v477_v25  ;;  %768 = vmatpush.msrb.mxu3 %v1701_v56  ;;  %v1766_v21 = vld [vmem:[#allocation11 + $0x140] sm:$0xff]  ;;  %v1769_v22 = vld [vmem:[#allocation11 + $0x50] sm:$0xff]  ;;  %v1772_v25 = vld [vmem:[#allocation11 + $0x148] sm:$0xff]  ;;  %812 = vmatpush.msra.mxu1 %v1760_v19 }
 0x152   :  { %751 = vmatpush.msrb.mxu2 %v1757_v17  ;;  %v1775_v26 = vld [vmem:[#allocation11 + $0x58] sm:$0xff]  ;;  %791 = vmatpush.msra.mxu0 %v1763_v20 }
 0x153   :  { %v468_v38 = vmul.f32 %v466_v31, %v442_v30  ;;  %v489_v42 = vmul.f32 0.044715, %v1654_v35  ;;  %769 = vmatpush.msrb.mxu3 %v1715_v62  ;;  %v1778_v31 = vld [vmem:[#allocation11 + $0x130] sm:$0xff]  ;;  %813 = vmatpush.msra.mxu1 %v1772_v25 }
 0x154   :  { %752 = vmatpush.msrb.mxu2 %v1769_v22  ;;  %792 = vmatpush.msra.mxu0 %v1775_v26 }
 0x155   :  { %v476_v45 = vmul.f32 %v472_v32, %v468_v38  ;;  %v491_v48 = vmul.f32 %v489_v42, %v1654_v35  ;;  %770 = vmatpush.msrb.mxu3 %v1728_v4  ;;  %v1781_v32 = vld [vmem:[#allocation11 + $0x40] sm:$0xff]  ;;  %v487_v38 = vmul.f32 0.5, %v1654_v35  ;;  %v717_v42 = vld [vmem:[#allocation11 + $0x138] sm:$0xff] }
 0x156   :  { %753 = vmatpush.msrb.mxu2 %v1781_v32  ;;  %814 = vmatpush.msra.mxu1 %v717_v42 }
 0x157   :  { %v1691_v51 = vadd.f32 %v480_v39, %v476_v45  ;;  %v493_v55 = vmul.f32 %v491_v48, %v1654_v35  ;;  %771 = vmatpush.msrb.mxu3 %v1741_v9  ;;  %v1786_v45 = vld [vmem:[#allocation11 + $0x48] sm:$0xff] }
 0x158   :  { %793 = vmatpush.msra.mxu0 %v1786_v45 }
 0x159   :  { %v488_v58 = vmul.f32 0.044715, %v1691_v51  ;;  %v495_v61 = vadd.f32 %v493_v55, %v1654_v35  ;;  %772 = vmatpush.msrb.mxu3 %v1754_v16  ;;  %v714_v55 = vld [vmem:[#allocation11 + $0x120] sm:$0xff]  ;;  %v1793_v35 = vld [vmem:[#allocation11 + $0x30] sm:$0xff] }
 0x15a   :  { %754 = vmatpush.msrb.mxu2 %v1793_v35 }
 0x15b   :  { %v490_v0 = vmul.f32 %v488_v58, %v1691_v51  ;;  %v497_v3 = vmul.f32 0.7978846, %v495_v61  ;;  %773 = vmatpush.msrb.mxu3 %v1766_v21  ;;  %v715_v58 = vld [vmem:[#allocation11 + $0x128] sm:$0xff]  ;;  %v1795_v61 = vld [vmem:[#allocation11 + $0x38] sm:$0xff] }
 0x15c   :  { %815 = vmatpush.msra.mxu1 %v715_v58  ;;  %794 = vmatpush.msra.mxu0 %v1795_v61 }
 0x15d   :  { %v492_v7 = vmul.f32 %v490_v0, %v1691_v51  ;;  %1031 = vtanh.f32 %v497_v3  ;;  %774 = vmatpush.msrb.mxu3 %v1778_v31  ;;  %v712_v3 = vld [vmem:[#allocation11 + $0x110] sm:$0xff] }
 0x15f   :  { %v494_v13 = vadd.f32 %v492_v7, %v1691_v51  ;;  %v713_v7 = vld [vmem:[#allocation11 + $0x118] sm:$0xff]  ;;  %775 = vmatpush.msrb.mxu3 %v714_v55 }
 0x160   :  { %816 = vmatpush.msra.mxu1 %v713_v7 }
 0x161   :  { %v496_v18 = vmul.f32 0.7978846, %v494_v13  ;;  %v486_v13 = vmul.f32 0.5, %v1691_v51  ;;  %776 = vmatpush.msrb.mxu3 %v712_v3 }
 0x163   :  { %1033 = vtanh.f32 %v496_v18  ;;  %v1032_v30 = vpop.eup %1031 }
 0x164   :  { %v501_v39 = vadd.f32 1.0, %v1032_v30 }
 0x166   :  { %v503_v48 = vmul.f32 %v501_v39, %v487_v38  ;;  %v710_v38 = vld [vmem:[#allocation11 + $0x100] sm:$0xff]  ;;  %v711_v39 = vld [vmem:[#allocation11 + $0x108] sm:$0xff] }
 0x167   :  { %777 = vmatpush.msrb.mxu3 %v710_v38  ;;  %817 = vmatpush.msra.mxu1 %v711_v39 }
 0x168   :  { %604 = vmatmul.f32.vlgmr.msra.gmra.mxu3 %v503_v48  ;;  %644 = vmatmul.f32.vlgmr.msrb.gmra.mxu1 %v503_v48 }
 0x169   :  { %v1034_v0 = vpop.eup %1033  ;;  %842 = vmatpush.msra.mxu3 %v1629_v23  ;;  %882 = vmatpush.msrb.mxu1 %v1631_v11  ;;  %v682_v23 = vld [vmem:[#allocation11 + $0x20] sm:$0xff]  ;;  %v683_v11 = vld [vmem:[#allocation11 + $0x28] sm:$0xff] }
 0x16a   :  { %v500_v18 = vadd.f32 1.0, %v1034_v0  ;;  %755 = vmatpush.msrb.mxu2 %v682_v23  ;;  %795 = vmatpush.msra.mxu0 %v683_v11 }
 0x16b   :  { %843 = vmatpush.msra.mxu3 %v1633_v24  ;;  %883 = vmatpush.msrb.mxu1 %v1636_v5  ;;  %v680_v24 = vld [vmem:[#allocation11 + $0x10] sm:$0xff]  ;;  %v681_v5 = vld [vmem:[#allocation11 + $0x18] sm:$0xff] }
 0x16c   :  { %v502_v30 = vmul.f32 %v500_v18, %v486_v13  ;;  %756 = vmatpush.msrb.mxu2 %v680_v24  ;;  %796 = vmatpush.msra.mxu0 %v681_v5 }
 0x16d   :  { %844 = vmatpush.msra.mxu3 %v1640_v27  ;;  %884 = vmatpush.msrb.mxu1 %v1649_v33  ;;  %v678_v27 = vld [vmem:[#allocation11] sm:$0xff]  ;;  %v679_v33 = vld [vmem:[#allocation11 + $0x8] sm:$0xff] }
 0x16e   :  { %584 = vmatmul.f32.vlgmr.msra.gmra.mxu2 %v502_v30  ;;  %624 = vmatmul.f32.vlgmr.msrb.gmra.mxu0 %v502_v30 }
 0x16f   :  { %845 = vmatpush.msra.mxu3 %v1657_v36  ;;  %885 = vmatpush.msrb.mxu1 %v1666_v40 }
 0x170   :  { %757 = vmatpush.msrb.mxu2 %v678_v27  ;;  %797 = vmatpush.msra.mxu0 %v679_v33 }
 0x171   :  { %846 = vmatpush.msra.mxu3 %v1673_v43  ;;  %886 = vmatpush.msrb.mxu1 %v1679_v46 }
 0x172   :  { %822 = vmatpush.msra.mxu2 %v1642_v28  ;;  %862 = vmatpush.msrb.mxu0 %v1644_v29 }
 0x173   :  { %847 = vmatpush.msra.mxu3 %v1686_v49  ;;  %887 = vmatpush.msrb.mxu1 %v1694_v53 }
 0x174   :  { %823 = vmatpush.msra.mxu2 %v1652_v34  ;;  %863 = vmatpush.msrb.mxu0 %v1660_v10 }
 0x175   :  { %848 = vmatpush.msra.mxu3 %v1701_v56  ;;  %888 = vmatpush.msrb.mxu1 %v1708_v59 }
 0x176   :  { %824 = vmatpush.msra.mxu2 %v1662_v37  ;;  %864 = vmatpush.msrb.mxu0 %v1669_v41 }
 0x177   :  { %849 = vmatpush.msra.mxu3 %v1715_v62  ;;  %889 = vmatpush.msrb.mxu1 %v1722_v1 }
 0x178   :  { %825 = vmatpush.msra.mxu2 %v1676_v44  ;;  %865 = vmatpush.msrb.mxu0 %v1682_v47 }
 0x179   :  { %850 = vmatpush.msra.mxu3 %v1728_v4  ;;  %890 = vmatpush.msrb.mxu1 %v1735_v52 }
 0x17a   :  { %826 = vmatpush.msra.mxu2 %v1689_v50  ;;  %866 = vmatpush.msrb.mxu0 %v1697_v54 }
 0x17b   :  { %851 = vmatpush.msra.mxu3 %v1741_v9  ;;  %891 = vmatpush.msrb.mxu1 %v1748_v14 }
 0x17c   :  { %827 = vmatpush.msra.mxu2 %v1704_v57  ;;  %867 = vmatpush.msrb.mxu0 %v1711_v60 }
 0x17d   :  { %852 = vmatpush.msra.mxu3 %v1754_v16  ;;  %892 = vmatpush.msrb.mxu1 %v1760_v19 }
 0x17e   :  { %828 = vmatpush.msra.mxu2 %v1718_v63  ;;  %868 = vmatpush.msrb.mxu0 %v1725_v2 }
 0x17f   :  { %853 = vmatpush.msra.mxu3 %v1766_v21  ;;  %893 = vmatpush.msrb.mxu1 %v1772_v25 }
 0x180   :  { %829 = vmatpush.msra.mxu2 %v1731_v6  ;;  %869 = vmatpush.msrb.mxu0 %v1738_v8 }
 0x181   :  { %854 = vmatpush.msra.mxu3 %v1778_v31  ;;  %894 = vmatpush.msrb.mxu1 %v717_v42 }
 0x182   :  { %830 = vmatpush.msra.mxu2 %v1744_v12  ;;  %870 = vmatpush.msrb.mxu0 %v1751_v15 }
 0x183   :  { %855 = vmatpush.msra.mxu3 %v714_v55  ;;  %895 = vmatpush.msrb.mxu1 %v715_v58 }
 0x184   :  { %831 = vmatpush.msra.mxu2 %v1757_v17  ;;  %871 = vmatpush.msrb.mxu0 %v1763_v20 }
 0x185   :  { %856 = vmatpush.msra.mxu3 %v712_v3  ;;  %896 = vmatpush.msrb.mxu1 %v713_v7 }
 0x186   :  { %832 = vmatpush.msra.mxu2 %v1769_v22  ;;  %872 = vmatpush.msrb.mxu0 %v1775_v26 }
 0x187   :  { %857 = vmatpush.msra.mxu3 %v710_v38  ;;  %897 = vmatpush.msrb.mxu1 %v711_v39 }
 0x188   :  { %833 = vmatpush.msra.mxu2 %v1781_v32  ;;  %873 = vmatpush.msrb.mxu0 %v1786_v45 }
 0x18a   :  { %834 = vmatpush.msra.mxu2 %v1793_v35  ;;  %874 = vmatpush.msrb.mxu0 %v1795_v61 }
 0x18c   :  { %835 = vmatpush.msra.mxu2 %v682_v23  ;;  %875 = vmatpush.msrb.mxu0 %v683_v11 }
 0x18e   :  { %836 = vmatpush.msra.mxu2 %v680_v24  ;;  %876 = vmatpush.msrb.mxu0 %v681_v5 }
 0x190   :  { %837 = vmatpush.msra.mxu2 %v678_v27  ;;  %877 = vmatpush.msrb.mxu0 %v679_v33  ;;  %v936_v33 = vld [vmem:[%s1885_s8] sm:$0x3]  ;;  %s1233_s8 = smov [#allocation13]  }
 0x1e5   :  { %v645_v28 = vpop.f32.mrf.mxu1 }
 0x1eb   :  { %v625_v29 = vpop.f32.mrf.mxu0  ;;  %v605_v41 = vpop.f32.mrf.mxu3 }
 0x1ec   :  { %v1851_v34 = vadd.f32 %v645_v28, %v625_v29 }
 0x1ee   :  { %v655_v36 = vsel %vm181_vm1, %v1851_v34, 0.0  ;;  %v663_v10 = vmul.f32 %v1851_v34, %v1851_v34 }
 0x1ef   :  { %v656_v37 = vrot.slane %v655_v36, 4 }
 0x1f0   :  { %v671_v40 = vsel %vm181_vm1, %v663_v10, 0.0 }
 0x1f1   :  { %v657_v43 = vadd.f32 %v656_v37, %v655_v36  ;;  %v672_v44 = vrot.slane %v671_v40, 4  ;;  %v585_v46 = vpop.f32.mrf.mxu2  ;;  %v944_v36 = vld [vmem:[%s1886_s9] sm:$0x3]  ;;  %s1001_s9 = sshll.u32 %s1233_s8, 4  ;;  %s1002_s9 = int_to_ptr.vmem [resolvable:$true] %s1001_s9 }
 0x1f2   :  { %v1858_v47 = vadd.f32 %v605_v41, %v585_v46  ;;  %v939_v41 = vperm.slane %v936_v33, 1 }
 0x1f3   :  { %v658_v49 = vrot.slane %v657_v43, 2  ;;  %v673_v50 = vadd.f32 %v672_v44, %v671_v40 }
 0x1f4   :  { %v648_v51 = vsel %vm181_vm1, %v1858_v47, 0.0  ;;  %v662_v53 = vmul.f32 %v1858_v47, %v1858_v47 }
 0x1f5   :  { %v659_v54 = vadd.f32 %v658_v49, %v657_v43  ;;  %v674_v56 = vrot.slane %v673_v50, 2  ;;  %v649_v57 = vrot.slane %v648_v51, 4  ;;  %v947_v49 = vperm.slane %v944_v36, 1 }
 0x1f6   :  { %v664_v59 = vsel %vm181_vm1, %v662_v53, 0.0 }
 0x1f7   :  { %v650_v60 = vadd.f32 %v649_v57, %v648_v51  ;;  %v665_v62 = vrot.slane %v664_v59, 4  ;;  %v660_v63 = vrot.slane %v659_v54, 1  ;;  %v675_v6 = vadd.f32 %v674_v56, %v673_v50 }
 0x1f9   :  { %v651_v1 = vrot.slane %v650_v60, 2  ;;  %v666_v2 = vadd.f32 %v665_v62, %v664_v59  ;;  %v661_v4 = vadd.f32 %v660_v63, %v659_v54  ;;  %v676_v12 = vrot.slane %v675_v6, 1 }
 0x1fa   :  { %v938_v59 = vperm.slane %v936_v33, 0 }
 0x1fb   :  { %v652_v52 = vadd.f32 %v651_v1, %v650_v60  ;;  %v667_v8 = vrot.slane %v666_v2, 2  ;;  %778 = vmatmul.f32.vlgmr.msrb.gmra.mxu3 %v661_v4  ;;  %818 = vmatmul.f32.vlgmr.msra.gmra.mxu1 %v661_v4  ;;  %v677_v16 = vadd.f32 %v676_v12, %v675_v6 }
 0x1fd   :  { %v653_v9 = vrot.slane %v652_v52, 1  ;;  %v668_v15 = vadd.f32 %v667_v8, %v666_v2 }
 0x1ff   :  { %v654_v14 = vadd.f32 %v653_v9, %v652_v52  ;;  %v669_v17 = vrot.slane %v668_v15, 1 }
 0x201   :  { %758 = vmatmul.f32.vlgmr.msrb.gmra.mxu2 %v654_v14  ;;  %798 = vmatmul.f32.vlgmr.msra.gmra.mxu0 %v654_v14  ;;  %v670_v19 = vadd.f32 %v669_v17, %v668_v15 }
 0x203   :  { %858 = vmatmul.f32.vlgmr.msra.gmra.mxu3 %v677_v16  ;;  %898 = vmatmul.f32.vlgmr.msrb.gmra.mxu1 %v677_v16 }
 0x209   :  { %838 = vmatmul.f32.vlgmr.msra.gmra.mxu2 %v670_v19  ;;  %878 = vmatmul.f32.vlgmr.msrb.gmra.mxu0 %v670_v19 }
 0x278   :  { %v819_v20 = vpop.f32.mrf.mxu1 }
 0x27e   :  { %v799_v21 = vpop.f32.mrf.mxu0  ;;  %v779_v22 = vpop.f32.mrf.mxu3 }
 0x27f   :  { %v820_v25 = vadd.f32 %v819_v20, %v799_v21 }
 0x280   :  { %v899_v31 = vpop.f32.mrf.mxu1 }
 0x281   :  { %v903_v42 = vmul.f32 %v820_v25, %v820_v25  ;;  %v907_v5 = vperm.slane %v820_v25, 0 }
 0x283   :  { %v909_v37 = vsub.f32 %v1851_v34, %v907_v5  ;;  %v946_v34 = vperm.slane %v944_v36, 0 }
 0x284   :  { %v759_v26 = vpop.f32.mrf.mxu2 }
 0x285   :  { %v780_v48 = vadd.f32 %v779_v22, %v759_v26 }
 0x286   :  { %v879_v32 = vpop.f32.mrf.mxu0  ;;  %v859_v35 = vpop.f32.mrf.mxu3 }
 0x287   :  { %v900_v45 = vadd.f32 %v899_v31, %v879_v32  ;;  %v902_v0 = vmul.f32 %v780_v48, %v780_v48  ;;  %v906_v44 = vperm.slane %v780_v48, 0 }
 0x289   :  { %v905_v55 = vsub.f32 %v900_v45, %v903_v42  ;;  %v908_v54 = vsub.f32 %v1858_v47, %v906_v44 }
 0x28b   :  { %v911_v58 = vadd.f32 1e-05, %v905_v55 }
 0x28c   :  { %v839_v61 = vpop.f32.mrf.mxu2 }
 0x28d   :  { %1035 = vrsqrt.f32 %v911_v58  ;;  %v860_v3 = vadd.f32 %v859_v35, %v839_v61  ;;  %vm928_vm9 = vweird.f32 %v911_v58 }
 0x28f   :  { %v904_v7 = vsub.f32 %v860_v3, %v902_v0 }
 0x291   :  { %v910_v13 = vadd.f32 1e-05, %v904_v7 }
 0x293   :  { %v1036_v18 = vpop.eup %1035  ;;  %1037 = vrsqrt.f32 %v910_v13  ;;  %vm918_vm12 = vweird.f32 %v910_v13 }
 0x294   :  { %v923_v30 = vmul.f32 %v1036_v18, %v911_v58  ;;  %vm929_vm8 = vweird.f32 %v1036_v18 }
 0x295   :  { %vm930_vm10 = vmor %vm928_vm9, %vm929_vm8 }
 0x296   :  { %v924_v38 = vmul.f32 %v1036_v18, %v923_v30 }
 0x298   :  { %v925_v39 = vmul.f32 0.5, %v924_v38 }
 0x299   :  { %v1038_v23 = vpop.eup %1037 }
 0x29a   :  { %v926_v11 = vsub.f32 1.5, %v925_v39  ;;  %v913_v24 = vmul.f32 %v1038_v23, %v910_v13  ;;  %vm919_vm11 = vweird.f32 %v1038_v23 }
 0x29b   :  { %vm920_vm13 = vmor %vm918_vm12, %vm919_vm11 }
 0x29c   :  { %v927_v27 = vmul.f32 %v1036_v18, %v926_v11  ;;  %v914_v28 = vmul.f32 %v1038_v23, %v913_v24 }
 0x29e   :  { %v931_v29 = vsel %vm930_vm10, %v1036_v18, %v927_v27  ;;  %v915_v10 = vmul.f32 0.5, %v914_v28 }
 0x29f   :  { %v933_v40 = vperm.slane %v931_v29, 0 }
 0x2a0   :  { %v916_v43 = vsub.f32 1.5, %v915_v10 }
 0x2a1   :  { %v935_v46 = vmul.f32 %v933_v40, %v909_v37 }
 0x2a2   :  { %v917_v50 = vmul.f32 %v1038_v23, %v916_v43 }
 0x2a3   :  { %v943_v51 = vmul.f32 %v939_v41, %v935_v46 }
 0x2a4   :  { %v921_v53 = vsel %vm920_vm13, %v1038_v23, %v917_v50 }
 0x2a5   :  { %v951_v56 = vadd.f32 %v947_v49, %v943_v51  ;;  %v932_v57 = vperm.slane %v921_v53, 0 }
 0x2a7   :  { %v953_v60 = vsub.f32 0.0, %v951_v56  ;;  %v934_v62 = vmul.f32 %v932_v57, %v908_v54 }
 0x2a9   :  { %v956_v63 = vmul.f32 1.442695, %v953_v60  ;;  %v942_v1 = vmul.f32 %v938_v59, %v934_v62 }
 0x2ab   :  { %1039 = vpow2.f32 %v956_v63  ;;  %v950_v2 = vadd.f32 %v946_v34, %v942_v1 }
 0x2ad   :  { %v952_v4 = vsub.f32 0.0, %v950_v2 }
 0x2af   :  { %v954_v6 = vmul.f32 1.442695, %v952_v4 }
 0x2b1   :  { %v1040_v52 = vpop.eup %1039  ;;  %1041 = vpow2.f32 %v954_v6 }
 0x2b2   :  { %v959_v8 = vadd.f32 1.0, %v1040_v52 }
 0x2b4   :  { %1043 = vrcp.f32 %v959_v8  ;;  %v986_v19 = vand.u32 2147483648, %v959_v8  ;;  %vm980_vm15 = vweird.f32 %v959_v8  ;;  %v984_v22 = vand.u32 2147483647, %v959_v8 }
 0x2b6   :  { %v987_v32 = vor.u32 1.1754944e-38, %v986_v19  ;;  %vm985_vm3 = vcmp.eq.f32.partialorder %v984_v22, 8.507059e+37 }
 0x2b7   :  { %v1042_v9 = vpop.eup %1041 }
 0x2b8   :  { %v958_v12 = vadd.f32 1.0, %v1042_v9 }
 0x2ba   :  { %v1044_v14 = vpop.eup %1043  ;;  %1045 = vrcp.f32 %v958_v12  ;;  %v971_v31 = vand.u32 2147483648, %v958_v12  ;;  %v969_v45 = vand.u32 2147483647, %v958_v12  ;;  %vm965_vm4 = vweird.f32 %v958_v12 }
 0x2bb   :  { %v976_v47 = vmul.f32 %v1044_v14, %v959_v8  ;;  %vm981_vm14 = vweird.f32 %v1044_v14 }
 0x2bc   :  { %vm982_vm0 = vmor %vm980_vm15, %vm981_vm14  ;;  %v972_v58 = vor.u32 1.1754944e-38, %v971_v31  ;;  %vm970_vm6 = vcmp.eq.f32.partialorder %v969_v45, 8.507059e+37 }
 0x2bd   :  { %v977_v15 = vsub.f32 1.0, %v976_v47 }
 0x2bf   :  { %v978_v16 = vmul.f32 %v1044_v14, %v977_v15 }
 0x2c0   :  { %v1046_v17 = vpop.eup %1045 }
 0x2c1   :  { %v961_v20 = vmul.f32 %v1046_v17, %v958_v12  ;;  %v979_v21 = vadd.f32 %v1044_v14, %v978_v16  ;;  %vm966_vm2 = vweird.f32 %v1046_v17 }
 0x2c2   :  { %vm967_vm5 = vmor %vm965_vm4, %vm966_vm2 }
 0x2c3   :  { %v962_v25 = vsub.f32 1.0, %v961_v20  ;;  %v983_v26 = vsel %vm982_vm0, %v1044_v14, %v979_v21 }
 0x2c4   :  { %v988_v48 = vsel %vm985_vm3, %v987_v32, %v983_v26 }
 0x2c5   :  { %v963_v42 = vmul.f32 %v1046_v17, %v962_v25  ;;  %v992_v61 = vrot.slane %v988_v48, 6 }
 0x2c7   :  { %v964_v55 = vadd.f32 %v1046_v17, %v963_v42 }
 0x2c9   :  { %v968_v35 = vsel %vm967_vm5, %v1046_v17, %v964_v55 }
 0x2ca   :  { %v973_v0 = vsel %vm970_vm6, %v972_v58, %v968_v35 }
 0x2cb   :  { %v993_v3 = vsel %vm181_vm1, %v973_v0, %v992_v61 }
 0x2cc   :  { %995 = vst [vmem:[#allocation13] sm:$0xf] %v993_v3 }
 0x2cd   :  { %1006 = dma.vmem_to_hbm [thread:$0]  %s1002_s9, 64, %s1004_s26, [#allocation4]  }
 0x2ce   :  { %1223 = dma.done.wait [#allocation4], 64  }
 0x2cf   :  { %1224 = vsyncadd [#allocation4], 4294967232 }
 0x2d0   :  { %1011 = vsyncpa [#allocation3], 1 }
 0x2d1   :  { %1012 = vsyncpa [#allocation6], 1 }
 0x2d2   :  { %1013 = vsyncpa [#allocation9], 1 }
 0x2d3   :  { %1014 = vsyncpa [#allocation12], 1 }
 0x2d4   :  { %1015 = vsyncpa [#allocation4], 1 }

</bundles_post_ra>
